<compile_context>
chip_gen: v6e
topology: v6e:2x2x1
jax: 0.10.0
libtpu: 0.0.40
codegen_flags: <defaults>
</compile_context>

<pallas_src>
import math

import jax
import jax.numpy as jnp
from jax.experimental import pallas as pl
from jax.experimental.pallas import tpu as pltpu


# ------------------------------ Pallas kernel -------------------------------

def _attention_kernel(enc_ref, hid_ref, w_eo_ref, w_h_ref, b_ref, out_ref):
    """enc_ref:  [L, H]  encoder_output (batch squeezed)
       hid_ref:  [1, H]  encoder_hidden
       w_eo_ref: [1, H]  attn.weight[:, :H]
       w_h_ref:  [1, H]  attn.weight[:, H:]
       b_ref:    [1, 1]  attn.bias
       out_ref:  [1, H]  attention-applied context vector
    """
    enc = enc_ref[...]                                           # [L, H] f32
    hid = hid_ref[...]                                           # [1, H]

    # Linear(2H -> 1) on cat([enc, hid]):  s[t] = enc[t]·w_eo + hid·w_h + b
    # The hidden contribution + bias is constant over t; compute it once.
    c = jnp.sum(hid * w_h_ref[...], axis=-1, keepdims=True) + b_ref[...]   # [1, 1]
    s = jnp.sum(enc * w_eo_ref[...], axis=-1, keepdims=True) + c           # [L, 1]

    # softmax over the sequence (dim 0), numerically stable.
    s = s - jnp.max(s, axis=0, keepdims=True)
    e = jnp.exp(s)
    w = e / jnp.sum(e, axis=0, keepdims=True)                              # [L, 1]

    # att_weights^T @ encoder_output  ==  sum_t w[t] * enc[t]
    out_ref[...] = jnp.sum(w * enc, axis=0, keepdims=True)                 # [1, H]


# --------------------------------- wrapper ----------------------------------

def attention_forward(params, encoder_output, encoder_hidden, window_size):
    """encoder_output: [max_length, 1, H]; encoder_hidden: [1, 1, H].
    Returns att_applied: [1, 1, H] (matches AttentionLayer.forward)."""
    L, B, H = encoder_output.shape
    assert B == 1 and encoder_hidden.shape == (1, 1, H)
    # The PyTorch cat along dim=2 requires max_length == window_size.
    assert L == window_size, (L, window_size)

    w = params["attn_w"].astype(jnp.float32)          # [1, 2H]
    b = params["attn_b"].astype(jnp.float32)          # [1]

    enc = encoder_output[:, 0, :].astype(jnp.float32)   # [L, H]
    hid = encoder_hidden[0].astype(jnp.float32)         # [1, H]
    w_eo = w[:, :H]                                      # [1, H] (split at trace time)
    w_h = w[:, H:]                                       # [1, H]
    b2 = b.reshape(1, 1)                                 # [1, 1]

    out = pl.pallas_call(
        _attention_kernel,
        out_shape=jax.ShapeDtypeStruct((1, H), jnp.float32),
        in_specs=[
            pl.BlockSpec(memory_space=pltpu.MemorySpace.VMEM),   # enc
            pl.BlockSpec(memory_space=pltpu.MemorySpace.VMEM),   # hid
            pl.BlockSpec(memory_space=pltpu.MemorySpace.VMEM),   # w_eo
            pl.BlockSpec(memory_space=pltpu.MemorySpace.VMEM),   # w_h
            pl.BlockSpec(memory_space=pltpu.MemorySpace.VMEM),   # bias
        ],
        out_specs=pl.BlockSpec(memory_space=pltpu.MemorySpace.VMEM),
    )(enc, hid, w_eo, w_h, b2)

    return out.reshape(1, 1, H)


# ------------------------------- parameters ---------------------------------

def init_params(key, hidden_size):
    # nn.Linear(2H, 1) default init: U(-1/sqrt(2H), 1/sqrt(2H))
    k_w, k_b = jax.random.split(key)
    bound = 1.0 / math.sqrt(2 * hidden_size)
    return {
        "attn_w": jax.random.uniform(k_w, (1, 2 * hidden_size), jnp.float32,
                                     -bound, bound),
        "attn_b": jax.random.uniform(k_b, (1,), jnp.float32, -bound, bound),
    }


# ------------------------------ pure-JAX check -------------------------------

def _reference(params, encoder_output, encoder_hidden, window_size):
    L, B, H = encoder_output.shape
    hidden_temp = jnp.broadcast_to(encoder_hidden[0], (window_size, B, H))
    att_input = jnp.concatenate([encoder_output, hidden_temp], axis=2)   # [L,1,2H]
    scores = att_input @ params["attn_w"].T + params["attn_b"]           # [L,1,1]
    att_w = jax.nn.softmax(scores, axis=0)
    return jnp.matmul(jnp.transpose(att_w, (1, 2, 0)),
                      jnp.transpose(encoder_output, (1, 0, 2)))          # [1,1,H]


if __name__ == "__main__":
    key = jax.random.PRNGKey(0)
    k_param, k_out, k_hid = jax.random.split(key, 3)

    hidden_size = 32
    window_size = 8            # == max_length (required by the reference cat)
    max_length = window_size

    params = init_params(k_param, hidden_size)
    encoder_output = jax.random.normal(
        k_out, (max_length, 1, hidden_size), jnp.float32)
    encoder_hidden = jax.random.normal(
        k_hid, (1, 1, hidden_size), jnp.float32)

    att_applied = attention_forward(params, encoder_output, encoder_hidden,
                                    window_size)
    att_applied = jax.block_until_ready(att_applied)

    assert att_applied.shape == (1, 1, hidden_size), att_applied.shape
    assert bool(jnp.all(jnp.isfinite(att_applied)))

    ref = _reference(params, encoder_output, encoder_hidden, window_size)
    assert bool(jnp.allclose(att_applied, ref, rtol=1e-4, atol=1e-5)), (
        jnp.max(jnp.abs(att_applied - ref)))

    print("KERNEL_OK")
</pallas_src>

<mosaic_0001>
module attributes {stable_mosaic.version = 11 : i64} {
  func.func @_attention_kernel(%arg0: memref<8x32xf32, #tpu.memory_space<vmem>>, %arg1: memref<1x32xf32, #tpu.memory_space<vmem>>, %arg2: memref<1x32xf32, #tpu.memory_space<vmem>>, %arg3: memref<1x32xf32, #tpu.memory_space<vmem>>, %arg4: memref<1x1xf32, #tpu.memory_space<vmem>>, %arg5: memref<1x32xf32, #tpu.memory_space<vmem>>) attributes {dimension_semantics = [], scalar_prefetch = 0 : i64, scratch_operands = 0 : i64, tpu.core_type = #tpu.core_type<tc>} {
    %c0 = arith.constant 0 : index
    %c0_0 = arith.constant 0 : index
    %0 = vector.load %arg0[%c0, %c0_0] : memref<8x32xf32, #tpu.memory_space<vmem>>, vector<8x32xf32>
    %c0_1 = arith.constant 0 : index
    %c0_2 = arith.constant 0 : index
    %1 = vector.load %arg1[%c0_1, %c0_2] : memref<1x32xf32, #tpu.memory_space<vmem>>, vector<1x32xf32>
    %c0_3 = arith.constant 0 : index
    %c0_4 = arith.constant 0 : index
    %2 = vector.load %arg3[%c0_3, %c0_4] : memref<1x32xf32, #tpu.memory_space<vmem>>, vector<1x32xf32>
    %3 = arith.mulf %1, %2 : vector<1x32xf32>
    %cst = arith.constant dense<0.000000e+00> : vector<1xf32>
    %4 = vector.multi_reduction <add>, %3, %cst [1] : vector<1x32xf32> to vector<1xf32>
    %5 = vector.shape_cast %4 : vector<1xf32> to vector<1x1xf32>
    %c0_5 = arith.constant 0 : index
    %c0_6 = arith.constant 0 : index
    %6 = vector.load %arg4[%c0_5, %c0_6] : memref<1x1xf32, #tpu.memory_space<vmem>>, vector<1x1xf32>
    %7 = arith.addf %5, %6 : vector<1x1xf32>
    %c0_7 = arith.constant 0 : index
    %c0_8 = arith.constant 0 : index
    %8 = vector.load %arg2[%c0_7, %c0_8] : memref<1x32xf32, #tpu.memory_space<vmem>>, vector<1x32xf32>
    %9 = vector.broadcast %8 : vector<1x32xf32> to vector<8x32xf32>
    %10 = arith.mulf %0, %9 : vector<8x32xf32>
    %cst_9 = arith.constant dense<0.000000e+00> : vector<8xf32>
    %11 = vector.multi_reduction <add>, %10, %cst_9 [1] : vector<8x32xf32> to vector<8xf32>
    %12 = vector.shape_cast %11 : vector<8xf32> to vector<8x1xf32>
    %13 = vector.broadcast %7 : vector<1x1xf32> to vector<8x1xf32>
    %14 = arith.addf %12, %13 : vector<8x1xf32>
    %cst_10 = arith.constant dense<0xFF800000> : vector<1xf32>
    %15 = vector.multi_reduction <maximumf>, %14, %cst_10 [0] : vector<8x1xf32> to vector<1xf32>
    %16 = vector.shape_cast %15 : vector<1xf32> to vector<1x1xf32>
    %17 = vector.broadcast %16 : vector<1x1xf32> to vector<8x1xf32>
    %18 = arith.subf %14, %17 : vector<8x1xf32>
    %19 = math.exp %18 : vector<8x1xf32>
    %cst_11 = arith.constant dense<0.000000e+00> : vector<1xf32>
    %20 = vector.multi_reduction <add>, %19, %cst_11 [0] : vector<8x1xf32> to vector<1xf32>
    %21 = vector.shape_cast %20 : vector<1xf32> to vector<1x1xf32>
    %22 = vector.broadcast %21 : vector<1x1xf32> to vector<8x1xf32>
    %23 = arith.divf %19, %22 : vector<8x1xf32>
    %24 = vector.broadcast %23 : vector<8x1xf32> to vector<8x32xf32>
    %25 = arith.mulf %24, %0 : vector<8x32xf32>
    %cst_12 = arith.constant dense<0.000000e+00> : vector<32xf32>
    %26 = vector.multi_reduction <add>, %25, %cst_12 [0] : vector<8x32xf32> to vector<32xf32>
    %27 = vector.shape_cast %26 : vector<32xf32> to vector<1x32xf32>
    %c0_13 = arith.constant 0 : index
    %c0_14 = arith.constant 0 : index
    %28 = vector.load %arg5[%c0_13, %c0_14] : memref<1x32xf32, #tpu.memory_space<vmem>>, vector<1x32xf32>
    tpu.vector_store %arg5[%c0_13, %c0_14], %27 {strides = array<i32>} : memref<1x32xf32, #tpu.memory_space<vmem>>, vector<1x32xf32>,
    return
  }
}

</mosaic_0001>

<bundles_post_ra>
// kernel: tpu_custom_call.1
= control target key start
LH: loop header
LB: loop body
LE: loop exit
PB: predicated region body
PF: predicated region fallthrough
CT: control target
= control target key end

     0   :  { %s220_s0 = inlined_call_operand.hbm [shape: f32[8,32], index: 0, kind: input, shape index: {}]   ;;  %s221_s1 = inlined_call_operand.vmem [shape: f32[1,32], index: 1, kind: input, shape index: {}]   ;;  %s222_s2 = inlined_call_operand.vmem [shape: f32[1,32], index: 2, kind: input, shape index: {}]   ;;  %s223_s3 = inlined_call_operand.vmem [shape: f32[1,32], index: 3, kind: input, shape index: {}]   ;;  %s224_s4 = inlined_call_operand.<no memory space> [shape: f32[1,1], index: 4, kind: input, shape index: {}]   ;;  %s225_s5 = inlined_call_operand.hbm [shape: f32[1,32], index: 5, kind: output, shape index: {}]  }
   0x1   :  { %v10_v0 = vstv %s224_s4 }
   0x2   :  { %11 = vst [vmem:[#allocation2] sm:$0x1] %v10_v0 }
   0x3   :  { %12 = vsyncpa [#allocation4], 0 }
   0x4   :  { %13 = vsyncpa [#allocation5], 0  ;;  %s165_s20 = smov [#allocation3]  }
   0x5   :  { %s20_s21 = sshll.u32 %s165_s20, 4  ;;  %s21_s21 = int_to_ptr.vmem [resolvable:$true] %s20_s21 }
   0x6   :  { %s129_s22 = scalar_lea.vmem %s21_s21, 128  ;;  %p134_p1 = scmp.lt.s32.totalorder %s21_s21, %s21_s21 }
   0x7   :  { %p130_p0 = scmp.ne.s32.totalorder %s21_s21, %s129_s22  ;;  %p135_p2 = scmp.lt.s32.totalorder %s129_s22, %s129_s22 }
   0x9   :  { %p136_p3 = por %p135_p2, %p134_p1 }
   0xb   :  { %p137_p4 = pnand %p136_p3, %p130_p0 }
   0xd   :  { %140 = shalt.err (!%p137_p4)
}
   0xe   :  { %23 = dma.hbm_to_vmem [thread:$0]  %s220_s0, 128, %s21_s21, [#allocation4]  }
   0xf   :  { %161 = dma.done.wait [#allocation4], 128  }
  0x10   :  { %162 = vsyncadd [#allocation4], 4294967168  ;;  %v36_v1 = vld [vmem:[%s221_s1] sm:$0x1]  ;;  %vm39_vm0 = vcmask 253952   ;;  %v35_v3 = vld [vmem:[#allocation3] sm:$0xff]  ;;  %v57_v10 = vlaneseq }
  0x11   :  { %v37_v2 = vld [vmem:[%s223_s3] sm:$0x1]  ;;  %vm53_vm1 = vcmask 261120   ;;  %v166_v9 = vmov 0   ;;  %vm62_vm2 = vcmask 7168   ;;  %s167_s0 = smov [#allocation6]  }
  0x12   :  { %v38_v4 = vmul.f32 %v37_v2, %v36_v1  ;;  %v111_v5 = vld [vmem:[%s222_s2] ss:$0 sm:$0xff]  ;;  %115 = vset.pattern.permute.xlu1 %v166_v9  ;;  %116 = vset.pattern.permute.xlu0 %v166_v9  ;;  %v58_v11 = vshrl.u32 %v57_v10, 7  ;;  %s102_s1 = sshll.u32 %s167_s0, 4  ;;  %s103_s1 = int_to_ptr.vmem [resolvable:$true] %s102_s1 }
  0x13   :  { %v52_v6 = vmul.f32 %v111_v5, %v35_v3  ;;  %v43_v12 = vld [vmem:[#allocation2] sm:$0x1]  ;;  %s141_s2 = scalar_lea.vmem %s103_s1, 16  ;;  %s145_s3 = scalar_lea.vmem %s103_s1, 32 }
  0x14   :  { %v40_v7 = vsel %vm39_vm0, %v38_v4, 0.0  ;;  %v59_v13 = vsub.s32 0, %v58_v11  ;;  %p142_p5 = scmp.ne.s32.totalorder %s103_s1, %s141_s2  ;;  %p146_p6 = scmp.lt.s32.totalorder %s103_s1, %s103_s1 }
  0x15   :  { %41 = vadd.xlane.f32.xlu0 %v40_v7  ;;  %v54_v8 = vsel %vm53_vm1, %v52_v6, 0.0  ;;  %p147_p7 = scmp.lt.s32.totalorder %s145_s3, %s141_s2 }
  0x17   :  { %p148_p8 = por %p147_p7, %p146_p6 }
  0x19   :  { %55 = vadd.xlane.f32.xlu0 %v54_v8  ;;  %p149_p9 = pnand %p148_p8, %p142_p5 }
  0x9e   :  { %v42_v14 = vpop.xlane.xlu0 %41 }
  0x9f   :  { %v44_v15 = vadd.f32 %v43_v12, %v42_v14 }
  0xa1   :  { %v60_v16 = vrot.slane %v44_v15, %v59_v13 }
  0xa2   :  { %v56_v17 = vpop.xlane.xlu0 %55 }
  0xa3   :  { %v61_v18 = vadd.f32 %v60_v16, %v56_v17 }
  0xa5   :  { %v63_v19 = vsel %vm62_vm2, %v61_v18, -inf }
  0xa6   :  { %v64_v20 = vrot.slane %v63_v19, 4 }
  0xa8   :  { %v65_v21 = vmax.f32 %v63_v19, %v64_v20 }
  0xaa   :  { %v66_v22 = vrot.slane %v65_v21, 2 }
  0xac   :  { %v67_v23 = vmax.f32 %v65_v21, %v66_v22 }
  0xae   :  { %v68_v24 = vrot.slane %v67_v23, 1 }
  0xb0   :  { %v69_v25 = vmax.f32 %v67_v23, %v68_v24 }
  0xb2   :  { %v70_v26 = vsub.f32 %v61_v18, %v69_v25 }
  0xb4   :  { %v71_v27 = vmul.f32 1.442695, %v70_v26 }
  0xb6   :  { %117 = vpow2.f32 %v71_v27 }
  0xc3   :  { %v118_v28 = vpop.eup %117 }
  0xc4   :  { %v73_v29 = vsel %vm62_vm2, %v118_v28, 0.0 }
  0xc5   :  { %v74_v30 = vrot.slane %v73_v29, 4 }
  0xc7   :  { %v75_v31 = vadd.f32 %v74_v30, %v73_v29 }
  0xc9   :  { %v76_v32 = vrot.slane %v75_v31, 2 }
  0xcb   :  { %v77_v33 = vadd.f32 %v76_v32, %v75_v31 }
  0xcd   :  { %v78_v34 = vrot.slane %v77_v33, 1 }
  0xcf   :  { %v79_v35 = vadd.f32 %v78_v34, %v77_v33 }
  0xd1   :  { %119 = vrcp.f32 %v79_v35 }
  0xde   :  { %v120_v36 = vpop.eup %119 }
  0xdf   :  { %v81_v37 = vmul.f32 %v120_v36, %v118_v28 }
  0xe1   :  { %84 = vperm.xlu1 %115, %v81_v37  }
 0x15c   :  { %v85_v38 = vpop.permute.xlu1 %84 }
 0x15d   :  { %v87_v39 = vmul.f32 %v85_v38, %v35_v3 }
 0x15f   :  { %v88_v40 = vsel %vm53_vm1, %v87_v39, 0.0 }
 0x160   :  { %v89_v41 = vrot.slane %v88_v40, 4 }
 0x162   :  { %v90_v42 = vadd.f32 %v89_v41, %v88_v40 }
 0x164   :  { %v91_v43 = vrot.slane %v90_v42, 2 }
 0x166   :  { %v92_v44 = vadd.f32 %v91_v43, %v90_v42 }
 0x168   :  { %v93_v45 = vrot.slane %v92_v44, 1 }
 0x16a   :  { %v94_v46 = vadd.f32 %v93_v45, %v92_v44 }
 0x16c   :  { %95 = vst.msk [vmem:[#allocation6] sm:$0x1] %vm39_vm0, %v94_v46 }
 0x16d   :  { %152 = shalt.err (!%p149_p9)
}
 0x16e   :  { %105 = dma.vmem_to_hbm [thread:$0]  %s103_s1, 16, %s225_s5, [#allocation5]  }
 0x16f   :  { %163 = dma.done.wait [#allocation5], 16  }
 0x170   :  { %164 = vsyncadd [#allocation5], 4294967280 }
 0x171   :  { %109 = vsyncpa [#allocation4], 1 }
 0x172   :  { %110 = vsyncpa [#allocation5], 1 }

</bundles_post_ra>
